<compile_context>
chip_gen: v5e
topology: v5e:2x2
jax: 0.10.0
libtpu: 0.0.40
codegen_flags: <defaults>
</compile_context>

<pallas_src>
import jax
import jax.numpy as jnp
from jax.experimental import pallas as pl
from jax.experimental.pallas import tpu as pltpu

# ---------------- problem sizes (small, deterministic) ----------------
B = 8          # batch
D = 32         # image feature dim
H = 32         # hidden size
L = 8          # max message length
V = 16         # vocab size
LVW = L * V    # 128 -- lane-dense message width (one f32 vreg row per example)
C = 2          # receiver classes (same / different)
EOS_ID = 0     # sender.eos_id
NEG = -1e30    # additive mask for non-class lanes of the classifier row

# weight-slab row offsets (all multiples of 8 -> aligned sublane slices)
R_WA, R_WM, R_GG, R_EW, R_WC = 0, 128, 256, 384, 512
R_BA, R_BM, R_CLSB, R_EOS, R_TLANE, R_LANEF = 640, 648, 656, 664, 672, 680
WS_ROWS = 688

VMEM_SPEC = pl.BlockSpec(memory_space=pltpu.MemorySpace.VMEM)


# =============== fused sender + pad + receiver + loss kernel ===============
def obverter_kernel(act_ref, ws_ref, out_ref):
    f32 = jnp.float32
    act = act_ref[0:B, :]                       # [B,128]  x1 | x2 | zeros
    lbl_oh = act_ref[B:2 * B, :]                # [B,128]  one-hot label at lanes 0:C

    wa = ws_ref[R_WA:R_WA + LVW, :]             # W_s (x1->h_s) & W_r (x2->h_r pre), merged
    wm = ws_ref[R_WM:R_WM + LVW, :]             # W_msg (all L steps at once)
    gg = ws_ref[R_GG:R_GG + LVW, :]             # block-diag ones: segmented sum / broadcast
    ew = ws_ref[R_EW:R_EW + LVW, :]             # E_tiled @ W_m2 (folded), -> h_r columns
    wc = ws_ref[R_WC:R_WC + LVW, :]             # classifier W_c
    ba = ws_ref[R_BA:R_BA + B, :]               # b_s | b_r            (pre-broadcast [B,128])
    bm = ws_ref[R_BM:R_BM + B, :]               # b_msg                (pre-broadcast)
    clsb = ws_ref[R_CLSB:R_CLSB + B, :]         # b_c + NEG on non-class lanes
    eos1h = ws_ref[R_EOS:R_EOS + B, :]          # 1.0 where lane % V == EOS_ID
    tlane = ws_ref[R_TLANE:R_TLANE + B, :]      # lane // V  as f32
    lanef = ws_ref[R_LANEF:R_LANEF + B, :]      # lane index as f32

    # ---- sender hidden + receiver x2-contribution in ONE MXU op ----
    pre = jnp.dot(act, wa, preferred_element_type=f32) + ba            # [B,128]
    h_s = jnp.tanh(pre)                                                # cols 0:H = h_s

    # ---- all L per-step message logits in ONE MXU op ----
    logits_all = jnp.dot(h_s, wm, preferred_element_type=f32) + bm     # [B,128]

    # ---- full-width segmented softmax: one exp, one exact divide ----
    m = jnp.max(logits_all, axis=-1, keepdims=True)                    # row max (stabiliser)
    e = jnp.exp(logits_all - m)
    denom = jnp.dot(e, gg, preferred_element_type=f32)                 # group-sum, broadcast
    probs = e / denom                                                  # [B,128]

    # ---- greedy EOS: token_t == EOS iff EOS lane attains its group max ----
    eos_b = jnp.dot(logits_all * eos1h, gg, preferred_element_type=f32)  # eos logit, broadcast
    beats = (logits_all > eos_b).astype(f32)
    n_gt = jnp.dot(beats, gg, preferred_element_type=f32)              # strictly-greater count
    is_eos = n_gt == 0.0
    first_eos = jnp.min(jnp.where(is_eos, tlane, float(L)), axis=-1, keepdims=True)
    lengths = jnp.minimum(first_eos + 1.0, float(L))                   # [B,1]

    # ---- _pad (training branch): soft message while t < length, hard EOS after ----
    padded = jnp.where(tlane < lengths, probs, eos1h)                  # [B,128]

    # ---- receiver hidden (E / W_m2 folded) + classifier ----
    h_r = jnp.tanh(pre + jnp.dot(padded, ew, preferred_element_type=f32))
    cls = jnp.dot(h_r, wc, preferred_element_type=f32) + clsb          # lanes 0:C real, else NEG

    # ---- CrossEntropyLoss(reduction='mean') + accuracy ----
    mx = jnp.max(cls, axis=-1, keepdims=True)
    lse = jnp.log(jnp.sum(jnp.exp(cls - mx), axis=-1, keepdims=True)) + mx
    picked = jnp.sum(lbl_oh * cls, axis=-1, keepdims=True)             # label logit (+b_c)
    loss = jnp.sum(lse - picked, axis=0, keepdims=True) * (1.0 / B)    # [1,1]

    label_f = jnp.sum(lbl_oh * lanef, axis=-1, keepdims=True)
    pred = jnp.min(jnp.where(cls >= mx, lanef, float(LVW)), axis=-1, keepdims=True)
    acc = jnp.sum((pred == label_f).astype(f32), axis=0, keepdims=True) * (1.0 / B)

    # ---- single output tile: rows 0:B = padded messages, row B = [loss, acc, 0...] ----
    out_ref[0:B, :] = padded
    ridx = jax.lax.broadcasted_iota(jnp.int32, (B, LVW), 0)
    lidx = jax.lax.broadcasted_iota(jnp.int32, (B, LVW), 1)
    stats = (jnp.where((ridx == 0) & (lidx == 0), loss, 0.0)
             + jnp.where((ridx == 0) & (lidx == 1), acc, 0.0))
    out_ref[B:2 * B, :] = stats


# ======================= params & packing =======================
def init_params(key):
    ks = jax.random.split(key, 8)
    return {
        "W_s":   jax.random.normal(ks[0], (D, H), jnp.float32) * 0.3,
        "b_s":   jnp.zeros((1, H), jnp.float32),
        "W_msg": jax.random.normal(ks[1], (H, L * V), jnp.float32) * 0.3,
        "b_msg": jax.random.normal(ks[2], (1, L * V), jnp.float32) * 0.1,
        "E":     jax.random.normal(ks[3], (V, H), jnp.float32) * 0.3,
        "W_r":   jax.random.normal(ks[4], (D, H), jnp.float32) * 0.3,
        "b_r":   jnp.zeros((1, H), jnp.float32),
        "W_m2":  jax.random.normal(ks[5], (H, H), jnp.float32) * 0.3,
        "W_c":   jax.random.normal(ks[6], (H, C), jnp.float32) * 0.3,
        "b_c":   jnp.zeros((1, C), jnp.float32),
    }


def pack_params(p):
    """Pack all weights/constants into ONE [688,128] f32 slab (done once)."""
    f32 = jnp.float32
    lane = jnp.arange(LVW)

    # zero-padded 128x128 weight blocks (keeps every matmul lane-dense)
    wa = jnp.zeros((LVW, LVW), f32)
    wa = wa.at[0:D, 0:H].set(p["W_s"])                # x1 lanes 0:D  -> h_s cols 0:H
    wa = wa.at[D:2 * D, H:2 * H].set(p["W_r"])        # x2 lanes D:2D -> h_r cols H:2H

    wm = jnp.zeros((LVW, LVW), f32).at[0:H, :].set(p["W_msg"])

    gg = (lane[:, None] // V == lane[None, :] // V).astype(f32)      # block-diag ones

    e_tiled = jnp.concatenate([p["E"]] * L, axis=0)                  # [LVW, H]
    ew = jnp.zeros((LVW, LVW), f32).at[:, H:2 * H].set(e_tiled @ p["W_m2"])

    wc = jnp.zeros((LVW, LVW), f32).at[H:2 * H, 0:C].set(p["W_c"])

    # [B,128] pre-broadcast bias / constant rows
    def bcast(row):
        return jnp.broadcast_to(row.reshape(1, LVW).astype(f32), (B, LVW))

    ba_row = jnp.zeros((LVW,), f32)
    ba_row = ba_row.at[0:H].set(p["b_s"].reshape(-1)).at[H:2 * H].set(p["b_r"].reshape(-1))
    clsb_row = jnp.full((LVW,), NEG, f32).at[0:C].set(p["b_c"].reshape(-1))
    eos_row = (lane % V == EOS_ID).astype(f32)
    tlane_row = (lane // V).astype(f32)
    lanef_row = lane.astype(f32)

    slab = jnp.concatenate(
        [wa, wm, gg, ew, wc,
         bcast(ba_row), bcast(p["b_msg"].reshape(-1)), bcast(clsb_row),
         bcast(eos_row), bcast(tlane_row), bcast(lanef_row)], axis=0)
    assert slab.shape == (WS_ROWS, LVW)
    return slab


# ======================= JAX wrapper =======================
@jax.jit
def obverter_trainer_forward(first_image, second_image, label, wslab):
    f32 = jnp.float32
    feat = jnp.zeros((B, LVW), f32)
    feat = feat.at[:, 0:D].set(first_image).at[:, D:2 * D].set(second_image)
    lbl = jnp.zeros((B, LVW), f32).at[:, 0:C].set(jax.nn.one_hot(label, C, dtype=f32))
    act = jnp.concatenate([feat, lbl], axis=0)                       # [2B, 128]

    out = pl.pallas_call(
        obverter_kernel,
        out_shape=jax.ShapeDtypeStruct((2 * B, LVW), f32),
        in_specs=[VMEM_SPEC, VMEM_SPEC],
        out_specs=VMEM_SPEC,
    )(act, wslab)

    messages = out[0:B, :].reshape(B, L, V)   # wrapper-side view only
    # training-mode return: (loss, accuracy, messages)
    return out[B, 0], out[B, 1], messages


# ======================= pure-JAX reference =======================
def reference_forward(first_image, second_image, label, p):
    h_s = jnp.tanh(first_image @ p["W_s"] + p["b_s"])
    logits = (h_s @ p["W_msg"] + p["b_msg"]).reshape(B, L, V)
    messages = jax.nn.softmax(logits, axis=-1)
    tok = jnp.argmax(logits, axis=-1)                                # [B,L]
    t_idx = jnp.arange(L)[None, :]
    first_eos = jnp.min(jnp.where(tok == EOS_ID, t_idx, L), axis=-1)
    lengths = jnp.minimum(first_eos + 1, L)
    mask = (t_idx < lengths[:, None]).astype(jnp.float32)            # [B,L]
    padded = messages * mask[:, :, None]
    padded = padded.at[:, :, EOS_ID].add(1.0 - mask)                 # training-mode _pad
    msg_feat = jnp.einsum("blv,vh->bh", padded, p["E"])
    h_r = jnp.tanh(second_image @ p["W_r"] + msg_feat @ p["W_m2"] + p["b_r"])
    pred = h_r @ p["W_c"] + p["b_c"]
    onehot = jax.nn.one_hot(label, C, dtype=jnp.float32)
    lse = jax.nn.logsumexp(pred, axis=-1)
    loss = jnp.mean(lse - jnp.sum(onehot * pred, axis=-1))
    acc = jnp.mean((jnp.argmax(pred, axis=-1) == label).astype(jnp.float32))
    return loss, acc, padded


if __name__ == "__main__":
    key = jax.random.PRNGKey(0)
    k1, k2, k3, kp = jax.random.split(key, 4)
    first_image = jax.random.normal(k1, (B, D), jnp.float32)
    second_image = jax.random.normal(k2, (B, D), jnp.float32)
    label = jax.random.randint(k3, (B,), 0, C, jnp.int32)

    params = init_params(kp)
    wslab = pack_params(params)

    loss, acc, messages = obverter_trainer_forward(first_image, second_image, label, wslab)
    jax.block_until_ready((loss, acc, messages))

    assert messages.shape == (B, L, V)
    assert bool(jnp.isfinite(loss)) and bool(jnp.isfinite(acc))
    # every (padded) per-step message is a valid distribution
    assert bool(jnp.all(jnp.abs(messages.sum(-1) - 1.0) < 1e-4))

    # pure-JAX reference check
    ref_loss, ref_acc, ref_msgs = reference_forward(first_image, second_image, label, params)
    assert bool(jnp.allclose(messages, ref_msgs, atol=1e-4, rtol=1e-4))
    assert bool(jnp.allclose(loss, ref_loss, atol=2e-4, rtol=2e-4))
    assert 0.0 <= float(acc) <= 1.0

    print("KERNEL_OK")
</pallas_src>

<mosaic_0001>
module attributes {stable_mosaic.version = 11 : i64} {
  func.func @obverter_kernel(%arg0: memref<16x128xf32, #tpu.memory_space<vmem>>, %arg1: memref<688x128xf32, #tpu.memory_space<vmem>>, %arg2: memref<16x128xf32, #tpu.memory_space<vmem>>) attributes {dimension_semantics = [], scalar_prefetch = 0 : i64, scratch_operands = 0 : i64, tpu.core_type = #tpu.core_type<tc>} {
    %c0 = arith.constant 0 : index
    %c0_0 = arith.constant 0 : index
    %0 = vector.load %arg0[%c0, %c0_0] : memref<16x128xf32, #tpu.memory_space<vmem>>, vector<8x128xf32>
    %c8 = arith.constant 8 : index
    %c0_1 = arith.constant 0 : index
    %1 = vector.load %arg0[%c8, %c0_1] : memref<16x128xf32, #tpu.memory_space<vmem>>, vector<8x128xf32>
    %c0_2 = arith.constant 0 : index
    %c0_3 = arith.constant 0 : index
    %2 = vector.load %arg1[%c0_2, %c0_3] : memref<688x128xf32, #tpu.memory_space<vmem>>, vector<128x128xf32>
    %c128 = arith.constant 128 : index
    %c0_4 = arith.constant 0 : index
    %3 = vector.load %arg1[%c128, %c0_4] : memref<688x128xf32, #tpu.memory_space<vmem>>, vector<128x128xf32>
    %c256 = arith.constant 256 : index
    %c0_5 = arith.constant 0 : index
    %4 = vector.load %arg1[%c256, %c0_5] : memref<688x128xf32, #tpu.memory_space<vmem>>, vector<128x128xf32>
    %c384 = arith.constant 384 : index
    %c0_6 = arith.constant 0 : index
    %5 = vector.load %arg1[%c384, %c0_6] : memref<688x128xf32, #tpu.memory_space<vmem>>, vector<128x128xf32>
    %c512 = arith.constant 512 : index
    %c0_7 = arith.constant 0 : index
    %6 = vector.load %arg1[%c512, %c0_7] : memref<688x128xf32, #tpu.memory_space<vmem>>, vector<128x128xf32>
    %c640 = arith.constant 640 : index
    %c0_8 = arith.constant 0 : index
    %7 = vector.load %arg1[%c640, %c0_8] : memref<688x128xf32, #tpu.memory_space<vmem>>, vector<8x128xf32>
    %c648 = arith.constant 648 : index
    %c0_9 = arith.constant 0 : index
    %8 = vector.load %arg1[%c648, %c0_9] : memref<688x128xf32, #tpu.memory_space<vmem>>, vector<8x128xf32>
    %c656 = arith.constant 656 : index
    %c0_10 = arith.constant 0 : index
    %9 = vector.load %arg1[%c656, %c0_10] : memref<688x128xf32, #tpu.memory_space<vmem>>, vector<8x128xf32>
    %c664 = arith.constant 664 : index
    %c0_11 = arith.constant 0 : index
    %10 = vector.load %arg1[%c664, %c0_11] : memref<688x128xf32, #tpu.memory_space<vmem>>, vector<8x128xf32>
    %c672 = arith.constant 672 : index
    %c0_12 = arith.constant 0 : index
    %11 = vector.load %arg1[%c672, %c0_12] : memref<688x128xf32, #tpu.memory_space<vmem>>, vector<8x128xf32>
    %c680 = arith.constant 680 : index
    %c0_13 = arith.constant 0 : index
    %12 = vector.load %arg1[%c680, %c0_13] : memref<688x128xf32, #tpu.memory_space<vmem>>, vector<8x128xf32>
    %cst = arith.constant dense<0.000000e+00> : vector<8x128xf32>
    %13 = tpu.matmul %0, %2, %cst {dimension_numbers = #tpu.dot_dimension_numbers<[1], [0], [0], [1], [0, 0, 1, 1], [], []>} : vector<8x128xf32>, vector<128x128xf32>, vector<8x128xf32> -> vector<8x128xf32>
    %14 = arith.addf %13, %7 : vector<8x128xf32>
    %15 = math.tanh %14 : vector<8x128xf32>
    %cst_14 = arith.constant dense<0.000000e+00> : vector<8x128xf32>
    %16 = tpu.matmul %15, %3, %cst_14 {dimension_numbers = #tpu.dot_dimension_numbers<[1], [0], [0], [1], [0, 0, 1, 1], [], []>} : vector<8x128xf32>, vector<128x128xf32>, vector<8x128xf32> -> vector<8x128xf32>
    %17 = arith.addf %16, %8 : vector<8x128xf32>
    %cst_15 = arith.constant dense<0xFF800000> : vector<8xf32>
    %18 = vector.multi_reduction <maximumf>, %17, %cst_15 [1] : vector<8x128xf32> to vector<8xf32>
    %19 = vector.shape_cast %18 : vector<8xf32> to vector<8x1xf32>
    %20 = vector.broadcast %19 : vector<8x1xf32> to vector<8x128xf32>
    %21 = arith.subf %17, %20 : vector<8x128xf32>
    %22 = math.exp %21 : vector<8x128xf32>
    %cst_16 = arith.constant dense<0.000000e+00> : vector<8x128xf32>
    %23 = tpu.matmul %22, %4, %cst_16 {dimension_numbers = #tpu.dot_dimension_numbers<[1], [0], [0], [1], [0, 0, 1, 1], [], []>} : vector<8x128xf32>, vector<128x128xf32>, vector<8x128xf32> -> vector<8x128xf32>
    %24 = arith.divf %22, %23 : vector<8x128xf32>
    %25 = arith.mulf %17, %10 : vector<8x128xf32>
    %cst_17 = arith.constant dense<0.000000e+00> : vector<8x128xf32>
    %26 = tpu.matmul %25, %4, %cst_17 {dimension_numbers = #tpu.dot_dimension_numbers<[1], [0], [0], [1], [0, 0, 1, 1], [], []>} : vector<8x128xf32>, vector<128x128xf32>, vector<8x128xf32> -> vector<8x128xf32>
    %27 = arith.cmpf ogt, %17, %26 : vector<8x128xf32>
    %28 = arith.extui %27 : vector<8x128xi1> to vector<8x128xi32>
    %29 = arith.sitofp %28 : vector<8x128xi32> to vector<8x128xf32>
    %cst_18 = arith.constant dense<0.000000e+00> : vector<8x128xf32>
    %30 = tpu.matmul %29, %4, %cst_18 {dimension_numbers = #tpu.dot_dimension_numbers<[1], [0], [0], [1], [0, 0, 1, 1], [], []>} : vector<8x128xf32>, vector<128x128xf32>, vector<8x128xf32> -> vector<8x128xf32>
    %cst_19 = arith.constant 0.000000e+00 : f32
    %31 = vector.broadcast %cst_19 : f32 to vector<8x128xf32>
    %32 = arith.cmpf oeq, %30, %31 : vector<8x128xf32>
    %cst_20 = arith.constant 8.000000e+00 : f32
    %33 = vector.broadcast %cst_20 : f32 to vector<8x128xf32>
    %34 = arith.select %32, %11, %33 : vector<8x128xi1>, vector<8x128xf32>
    %cst_21 = arith.constant dense<0x7F800000> : vector<8xf32>
    %35 = vector.multi_reduction <minimumf>, %34, %cst_21 [1] : vector<8x128xf32> to vector<8xf32>
    %36 = vector.shape_cast %35 : vector<8xf32> to vector<8x1xf32>
    %cst_22 = arith.constant 1.000000e+00 : f32
    %37 = vector.broadcast %cst_22 : f32 to vector<8x1xf32>
    %38 = arith.addf %36, %37 : vector<8x1xf32>
    %cst_23 = arith.constant 8.000000e+00 : f32
    %39 = vector.broadcast %cst_23 : f32 to vector<8x1xf32>
    %40 = arith.minimumf %38, %39 : vector<8x1xf32>
    %41 = vector.broadcast %40 : vector<8x1xf32> to vector<8x128xf32>
    %42 = arith.cmpf olt, %11, %41 : vector<8x128xf32>
    %43 = arith.select %42, %24, %10 : vector<8x128xi1>, vector<8x128xf32>
    %cst_24 = arith.constant dense<0.000000e+00> : vector<8x128xf32>
    %44 = tpu.matmul %43, %5, %cst_24 {dimension_numbers = #tpu.dot_dimension_numbers<[1], [0], [0], [1], [0, 0, 1, 1], [], []>} : vector<8x128xf32>, vector<128x128xf32>, vector<8x128xf32> -> vector<8x128xf32>
    %45 = arith.addf %14, %44 : vector<8x128xf32>
    %46 = math.tanh %45 : vector<8x128xf32>
    %cst_25 = arith.constant dense<0.000000e+00> : vector<8x128xf32>
    %47 = tpu.matmul %46, %6, %cst_25 {dimension_numbers = #tpu.dot_dimension_numbers<[1], [0], [0], [1], [0, 0, 1, 1], [], []>} : vector<8x128xf32>, vector<128x128xf32>, vector<8x128xf32> -> vector<8x128xf32>
    %48 = arith.addf %47, %9 : vector<8x128xf32>
    %cst_26 = arith.constant dense<0xFF800000> : vector<8xf32>
    %49 = vector.multi_reduction <maximumf>, %48, %cst_26 [1] : vector<8x128xf32> to vector<8xf32>
    %50 = vector.shape_cast %49 : vector<8xf32> to vector<8x1xf32>
    %51 = vector.broadcast %50 : vector<8x1xf32> to vector<8x128xf32>
    %52 = arith.subf %48, %51 : vector<8x128xf32>
    %53 = math.exp %52 : vector<8x128xf32>
    %cst_27 = arith.constant dense<0.000000e+00> : vector<8xf32>
    %54 = vector.multi_reduction <add>, %53, %cst_27 [1] : vector<8x128xf32> to vector<8xf32>
    %55 = vector.shape_cast %54 : vector<8xf32> to vector<8x1xf32>
    %56 = math.log %55 : vector<8x1xf32>
    %57 = arith.addf %56, %50 : vector<8x1xf32>
    %58 = arith.mulf %1, %48 : vector<8x128xf32>
    %cst_28 = arith.constant dense<0.000000e+00> : vector<8xf32>
    %59 = vector.multi_reduction <add>, %58, %cst_28 [1] : vector<8x128xf32> to vector<8xf32>
    %60 = vector.shape_cast %59 : vector<8xf32> to vector<8x1xf32>
    %61 = arith.subf %57, %60 : vector<8x1xf32>
    %cst_29 = arith.constant dense<0.000000e+00> : vector<1xf32>
    %62 = vector.multi_reduction <add>, %61, %cst_29 [0] : vector<8x1xf32> to vector<1xf32>
    %63 = vector.shape_cast %62 : vector<1xf32> to vector<1x1xf32>
    %cst_30 = arith.constant 1.250000e-01 : f32
    %64 = vector.broadcast %cst_30 : f32 to vector<1x1xf32>
    %65 = arith.mulf %63, %64 : vector<1x1xf32>
    %66 = arith.mulf %1, %12 : vector<8x128xf32>
    %cst_31 = arith.constant dense<0.000000e+00> : vector<8xf32>
    %67 = vector.multi_reduction <add>, %66, %cst_31 [1] : vector<8x128xf32> to vector<8xf32>
    %68 = vector.shape_cast %67 : vector<8xf32> to vector<8x1xf32>
    %69 = vector.broadcast %50 : vector<8x1xf32> to vector<8x128xf32>
    %70 = arith.cmpf oge, %48, %69 : vector<8x128xf32>
    %cst_32 = arith.constant 1.280000e+02 : f32
    %71 = vector.broadcast %cst_32 : f32 to vector<8x128xf32>
    %72 = arith.select %70, %12, %71 : vector<8x128xi1>, vector<8x128xf32>
    %cst_33 = arith.constant dense<0x7F800000> : vector<8xf32>
    %73 = vector.multi_reduction <minimumf>, %72, %cst_33 [1] : vector<8x128xf32> to vector<8xf32>
    %74 = vector.shape_cast %73 : vector<8xf32> to vector<8x1xf32>
    %75 = arith.cmpf oeq, %74, %68 : vector<8x1xf32>
    %76 = arith.extui %75 : vector<8x1xi1> to vector<8x1xi32>
    %77 = arith.sitofp %76 : vector<8x1xi32> to vector<8x1xf32>
    %cst_34 = arith.constant dense<0.000000e+00> : vector<1xf32>
    %78 = vector.multi_reduction <add>, %77, %cst_34 [0] : vector<8x1xf32> to vector<1xf32>
    %79 = vector.shape_cast %78 : vector<1xf32> to vector<1x1xf32>
    %cst_35 = arith.constant 1.250000e-01 : f32
    %80 = vector.broadcast %cst_35 : f32 to vector<1x1xf32>
    %81 = arith.mulf %79, %80 : vector<1x1xf32>
    %c0_36 = arith.constant 0 : index
    %c0_37 = arith.constant 0 : index
    %82 = vector.load %arg2[%c0_36, %c0_37] : memref<16x128xf32, #tpu.memory_space<vmem>>, vector<8x128xf32>
    tpu.vector_store %arg2[%c0_36, %c0_37], %43 {strides = array<i32>} : memref<16x128xf32, #tpu.memory_space<vmem>>, vector<8x128xf32>,
    %83 = tpu.iota {dimensions = array<i32: 0>} : vector<8x128xi32>
    %84 = tpu.iota {dimensions = array<i32: 1>} : vector<8x128xi32>
    %c0_i32 = arith.constant 0 : i32
    %85 = vector.broadcast %c0_i32 : i32 to vector<8x128xi32>
    %86 = arith.cmpi eq, %83, %85 : vector<8x128xi32>
    %c0_i32_38 = arith.constant 0 : i32
    %87 = vector.broadcast %c0_i32_38 : i32 to vector<8x128xi32>
    %88 = arith.cmpi eq, %84, %87 : vector<8x128xi32>
    %89 = arith.andi %86, %88 : vector<8x128xi1>
    %cst_39 = arith.constant 0.000000e+00 : f32
    %90 = vector.shape_cast %65 : vector<1x1xf32> to vector<1x1xf32>
    %91 = vector.broadcast %90 : vector<1x1xf32> to vector<8x128xf32>
    %92 = vector.broadcast %cst_39 : f32 to vector<8x128xf32>
    %93 = arith.select %89, %91, %92 : vector<8x128xi1>, vector<8x128xf32>
    %c0_i32_40 = arith.constant 0 : i32
    %94 = vector.broadcast %c0_i32_40 : i32 to vector<8x128xi32>
    %95 = arith.cmpi eq, %83, %94 : vector<8x128xi32>
    %c1_i32 = arith.constant 1 : i32
    %96 = vector.broadcast %c1_i32 : i32 to vector<8x128xi32>
    %97 = arith.cmpi eq, %84, %96 : vector<8x128xi32>
    %98 = arith.andi %95, %97 : vector<8x128xi1>
    %cst_41 = arith.constant 0.000000e+00 : f32
    %99 = vector.shape_cast %81 : vector<1x1xf32> to vector<1x1xf32>
    %100 = vector.broadcast %99 : vector<1x1xf32> to vector<8x128xf32>
    %101 = vector.broadcast %cst_41 : f32 to vector<8x128xf32>
    %102 = arith.select %98, %100, %101 : vector<8x128xi1>, vector<8x128xf32>
    %103 = arith.addf %93, %102 : vector<8x128xf32>
    %c8_42 = arith.constant 8 : index
    %c0_43 = arith.constant 0 : index
    %104 = vector.load %arg2[%c8_42, %c0_43] : memref<16x128xf32, #tpu.memory_space<vmem>>, vector<8x128xf32>
    tpu.vector_store %arg2[%c8_42, %c0_43], %103 {strides = array<i32>} : memref<16x128xf32, #tpu.memory_space<vmem>>, vector<8x128xf32>,
    return
  }
}

</mosaic_0001>

<bundles_post_ra>
// kernel: obverter_trainer_forward.1
= control target key start
LH: loop header
LB: loop body
LE: loop exit
PB: predicated region body
PF: predicated region fallthrough
CT: control target
= control target key end

     0   :  { %7 = vsyncpa [#allocation3], 0  ;;  %s393_s12 = smov [#allocation2]   ;;  %s394_s14 = smov 128   ;;  %s440_s0 = inlined_call_operand.vmem [shape: f32[16,128], index: 0, kind: input, shape index: {}]   ;;  %s441_s1 = inlined_call_operand.hbm [shape: f32[688,128], index: 1, kind: input, shape index: {}]   ;;  %s442_s2 = inlined_call_operand.vmem [shape: f32[16,128], index: 2, kind: output, shape index: {}]  }
   0x1   :  { %s14_s11 = sshll.u32 %s441_s1, 4  ;;  %s16_s13 = sshll.u32 %s393_s12, 4  ;;  %s15_s11 = int_to_ptr.hbm [resolvable:$true] %s14_s11  ;;  %s17_s13 = int_to_ptr.vmem [resolvable:$true] %s16_s13 }
   0x2   :  { %s395_s15 = smov 8  }
   0x3   :  { %22 = dma.hbm_to_vmem [thread:$0]  %s15_s11, 11008, %s17_s13, [#allocation3], %s394_s14, %s394_s14, %s395_s15  }
   0x4   :  { %391 = dma.done.wait [#allocation3], 11008  }
   0x5   :  { %392 = vsyncadd [#allocation3], 4294956288  ;;  %v44_v0 = vld [vmem:[#allocation2 + $0x78] sm:$0xff]  ;;  %v43_v1 = vld [vmem:[#allocation2 + $0x70] sm:$0xff]  ;;  %v396_v63 = vmov 1.0  }
   0x6   :  { %115 = vmatpush.msra.mxu0 %v44_v0  ;;  %v42_v2 = vld [vmem:[#allocation2 + $0x68] sm:$0xff]  ;;  %v41_v3 = vld [vmem:[#allocation2 + $0x60] sm:$0xff]  ;;  %v60_v4 = vld [vmem:[#allocation2 + $0xf8] sm:$0xff] }
   0x7   :  { %v40_v5 = vld [vmem:[#allocation2 + $0x58] sm:$0xff]  ;;  %136 = vmatpush.msra.mxu1 %v60_v4  ;;  %v59_v6 = vld [vmem:[#allocation2 + $0xf0] sm:$0xff]  ;;  %v58_v7 = vld [vmem:[#allocation2 + $0xe8] sm:$0xff] }
   0x8   :  { %116 = vmatpush.msra.mxu0 %v43_v1  ;;  %v39_v8 = vld [vmem:[#allocation2 + $0x50] sm:$0xff]  ;;  %v57_v9 = vld [vmem:[#allocation2 + $0xe0] sm:$0xff]  ;;  %v38_v10 = vld [vmem:[#allocation2 + $0x48] sm:$0xff] }
   0x9   :  { %137 = vmatpush.msra.mxu1 %v59_v6  ;;  %v56_v11 = vld [vmem:[#allocation2 + $0xd8] sm:$0xff]  ;;  %v37_v12 = vld [vmem:[#allocation2 + $0x40] sm:$0xff]  ;;  %v55_v13 = vld [vmem:[#allocation2 + $0xd0] sm:$0xff] }
   0xa   :  { %117 = vmatpush.msra.mxu0 %v42_v2  ;;  %v36_v14 = vld [vmem:[#allocation2 + $0x38] sm:$0xff]  ;;  %v54_v15 = vld [vmem:[#allocation2 + $0xc8] sm:$0xff]  ;;  %v35_v16 = vld [vmem:[#allocation2 + $0x30] sm:$0xff] }
   0xb   :  { %138 = vmatpush.msra.mxu1 %v58_v7  ;;  %v53_v17 = vld [vmem:[#allocation2 + $0xc0] sm:$0xff]  ;;  %v34_v18 = vld [vmem:[#allocation2 + $0x28] sm:$0xff]  ;;  %v52_v19 = vld [vmem:[#allocation2 + $0xb8] sm:$0xff] }
   0xc   :  { %118 = vmatpush.msra.mxu0 %v41_v3  ;;  %v33_v20 = vld [vmem:[#allocation2 + $0x20] sm:$0xff]  ;;  %v51_v21 = vld [vmem:[#allocation2 + $0xb0] sm:$0xff]  ;;  %v32_v22 = vld [vmem:[#allocation2 + $0x18] sm:$0xff] }
   0xd   :  { %139 = vmatpush.msra.mxu1 %v57_v9  ;;  %v50_v23 = vld [vmem:[#allocation2 + $0xa8] sm:$0xff]  ;;  %v31_v24 = vld [vmem:[#allocation2 + $0x10] sm:$0xff]  ;;  %v29_v26 = vld [vmem:[#allocation2] sm:$0xff] }
   0xe   :  { %119 = vmatpush.msra.mxu0 %v40_v5  ;;  %v30_v25 = vld [vmem:[#allocation2 + $0x8] sm:$0xff]  ;;  %v27_v27 = vld [vmem:[%s440_s0] sm:$0xff]  ;;  %v48_v29 = vld [vmem:[#allocation2 + $0x98] sm:$0xff] }
   0xf   :  { %140 = vmatpush.msra.mxu1 %v56_v11  ;;  %v49_v28 = vld [vmem:[#allocation2 + $0xa0] sm:$0xff]  ;;  %v47_v30 = vld [vmem:[#allocation2 + $0x90] sm:$0xff]  ;;  %v46_v31 = vld [vmem:[#allocation2 + $0x88] sm:$0xff] }
  0x10   :  { %120 = vmatpush.msra.mxu0 %v39_v8  ;;  %v45_v32 = vld [vmem:[#allocation2 + $0x80] sm:$0xff]  ;;  %v76_v33 = vld [vmem:[#allocation2 + $0x178] sm:$0xff]  ;;  %v75_v34 = vld [vmem:[#allocation2 + $0x170] sm:$0xff] }
  0x11   :  { %141 = vmatpush.msra.mxu1 %v55_v13  ;;  %197 = vmatpush.msra.mxu3 %v76_v33  ;;  %v74_v35 = vld [vmem:[#allocation2 + $0x168] sm:$0xff]  ;;  %v73_v36 = vld [vmem:[#allocation2 + $0x160] sm:$0xff]  ;;  %v72_v37 = vld [vmem:[#allocation2 + $0x158] sm:$0xff] }
  0x12   :  { %121 = vmatpush.msra.mxu0 %v38_v10  ;;  %161 = vmatpush.msra.mxu2 %v76_v33  ;;  %v71_v38 = vld [vmem:[#allocation2 + $0x150] sm:$0xff]  ;;  %v70_v39 = vld [vmem:[#allocation2 + $0x148] sm:$0xff]  ;;  %v69_v40 = vld [vmem:[#allocation2 + $0x140] sm:$0xff] }
  0x13   :  { %142 = vmatpush.msra.mxu1 %v54_v15  ;;  %198 = vmatpush.msra.mxu3 %v75_v34  ;;  %v68_v41 = vld [vmem:[#allocation2 + $0x138] sm:$0xff]  ;;  %v67_v42 = vld [vmem:[#allocation2 + $0x130] sm:$0xff]  ;;  %v66_v43 = vld [vmem:[#allocation2 + $0x128] sm:$0xff] }
  0x14   :  { %122 = vmatpush.msra.mxu0 %v37_v12  ;;  %162 = vmatpush.msra.mxu2 %v75_v34  ;;  %v109_v44 = vld [vmem:[#allocation2 + $0x280] sm:$0xff]  ;;  %v64_v47 = vld [vmem:[#allocation2 + $0x118] sm:$0xff]  ;;  %v63_v50 = vld [vmem:[#allocation2 + $0x110] sm:$0xff] }
  0x15   :  { %143 = vmatpush.msra.mxu1 %v53_v17  ;;  %199 = vmatpush.msra.mxu3 %v74_v35  ;;  %v65_v45 = vld [vmem:[#allocation2 + $0x120] sm:$0xff]  ;;  %v62_v51 = vld [vmem:[#allocation2 + $0x108] sm:$0xff]  ;;  %v422_v55 = vld [vmem:[#allocation2 + $0x298] sm:$0xff] }
  0x16   :  { %123 = vmatpush.msra.mxu0 %v36_v14  ;;  %163 = vmatpush.msra.mxu2 %v74_v35  ;;  %v61_v52 = vld [vmem:[#allocation2 + $0x100] sm:$0xff]  ;;  %v110_v53 = vld [vmem:[#allocation2 + $0x288] sm:$0xff]  ;;  %v92_v0 = vld [vmem:[#allocation2 + $0x1f8] sm:$0xff] }
  0x17   :  { %144 = vmatpush.msra.mxu1 %v52_v19  ;;  %200 = vmatpush.msra.mxu3 %v73_v36  ;;  %v91_v1 = vld [vmem:[#allocation2 + $0x1f0] sm:$0xff]  ;;  %v90_v2 = vld [vmem:[#allocation2 + $0x1e8] sm:$0xff]  ;;  %v89_v3 = vld [vmem:[#allocation2 + $0x1e0] sm:$0xff] }
  0x18   :  { %124 = vmatpush.msra.mxu0 %v35_v16  ;;  %164 = vmatpush.msra.mxu2 %v73_v36  ;;  %v88_v4 = vld [vmem:[#allocation2 + $0x1d8] sm:$0xff]  ;;  %v87_v5 = vld [vmem:[#allocation2 + $0x1d0] sm:$0xff]  ;;  %v86_v6 = vld [vmem:[#allocation2 + $0x1c8] sm:$0xff] }
  0x19   :  { %145 = vmatpush.msra.mxu1 %v51_v21  ;;  %201 = vmatpush.msra.mxu3 %v72_v37  ;;  %v85_v7 = vld [vmem:[#allocation2 + $0x1c0] sm:$0xff]  ;;  %v84_v8 = vld [vmem:[#allocation2 + $0x1b8] sm:$0xff]  ;;  %v83_v9 = vld [vmem:[#allocation2 + $0x1b0] sm:$0xff] }
  0x1a   :  { %125 = vmatpush.msra.mxu0 %v34_v18  ;;  %165 = vmatpush.msra.mxu2 %v72_v37  ;;  %v82_v10 = vld [vmem:[#allocation2 + $0x1a8] sm:$0xff]  ;;  %v113_v11 = vld [vmem:[#allocation2 + $0x2a0] sm:$0xff]  ;;  %v80_v15 = vld [vmem:[#allocation2 + $0x198] sm:$0xff] }
  0x1b   :  { %146 = vmatpush.msra.mxu1 %v50_v23  ;;  %202 = vmatpush.msra.mxu3 %v71_v38  ;;  %v81_v13 = vld [vmem:[#allocation2 + $0x1a0] sm:$0xff]  ;;  %v79_v16 = vld [vmem:[#allocation2 + $0x190] sm:$0xff]  ;;  %v78_v18 = vld [vmem:[#allocation2 + $0x188] sm:$0xff] }
  0x1c   :  { %126 = vmatpush.msra.mxu0 %v33_v20  ;;  %166 = vmatpush.msra.mxu2 %v71_v38  ;;  %v77_v19 = vld [vmem:[#allocation2 + $0x180] sm:$0xff]  ;;  %v108_v20 = vld [vmem:[#allocation2 + $0x278] sm:$0xff]  ;;  %v107_v21 = vld [vmem:[#allocation2 + $0x270] sm:$0xff] }
  0x1d   :  { %147 = vmatpush.msra.mxu1 %v49_v28  ;;  %203 = vmatpush.msra.mxu3 %v70_v39  ;;  %v102_v28 = vld [vmem:[#allocation2 + $0x248] sm:$0xff] }
  0x1e   :  { %127 = vmatpush.msra.mxu0 %v32_v22  ;;  %167 = vmatpush.msra.mxu2 %v70_v39  ;;  %v106_v22 = vld [vmem:[#allocation2 + $0x268] sm:$0xff] }
  0x1f   :  { %148 = vmatpush.msra.mxu1 %v48_v29  ;;  %204 = vmatpush.msra.mxu3 %v69_v40 }
  0x20   :  { %128 = vmatpush.msra.mxu0 %v31_v24  ;;  %168 = vmatpush.msra.mxu2 %v69_v40  ;;  %v105_v24 = vld [vmem:[#allocation2 + $0x260] sm:$0xff] }
  0x21   :  { %149 = vmatpush.msra.mxu1 %v47_v30  ;;  %205 = vmatpush.msra.mxu3 %v68_v41  ;;  %v101_v30 = vld [vmem:[#allocation2 + $0x240] sm:$0xff] }
  0x22   :  { %129 = vmatpush.msra.mxu0 %v30_v25  ;;  %169 = vmatpush.msra.mxu2 %v68_v41  ;;  %v104_v25 = vld [vmem:[#allocation2 + $0x258] sm:$0xff] }
  0x23   :  { %150 = vmatpush.msra.mxu1 %v46_v31  ;;  %206 = vmatpush.msra.mxu3 %v67_v42  ;;  %v100_v31 = vld [vmem:[#allocation2 + $0x238] sm:$0xff] }
  0x24   :  { %130 = vmatpush.msra.mxu0 %v29_v26  ;;  %170 = vmatpush.msra.mxu2 %v67_v42 }
  0x25   :  { %131 = vmatmul.f32.vlgmr.msra.gmra.mxu0 %v27_v27  ;;  %151 = vmatpush.msra.mxu1 %v45_v32  ;;  %v103_v27 = vld [vmem:[#allocation2 + $0x250] sm:$0xff] }
  0x26   :  { %220 = vmatpush.msrb.mxu0 %v76_v33  ;;  %207 = vmatpush.msra.mxu3 %v66_v43  ;;  %v99_v33 = vld [vmem:[#allocation2 + $0x230] sm:$0xff] }
  0x27   :  { %171 = vmatpush.msra.mxu2 %v66_v43  ;;  %248 = vmatpush.msrb.mxu1 %v92_v0 }
  0x28   :  { %221 = vmatpush.msrb.mxu0 %v75_v34  ;;  %208 = vmatpush.msra.mxu3 %v65_v45  ;;  %v98_v34 = vld [vmem:[#allocation2 + $0x228] sm:$0xff] }
  0x29   :  { %172 = vmatpush.msra.mxu2 %v65_v45  ;;  %249 = vmatpush.msrb.mxu1 %v91_v1 }
  0x2a   :  { %222 = vmatpush.msrb.mxu0 %v74_v35  ;;  %209 = vmatpush.msra.mxu3 %v64_v47 }
  0x2b   :  { %173 = vmatpush.msra.mxu2 %v64_v47  ;;  %250 = vmatpush.msrb.mxu1 %v90_v2 }
  0x2c   :  { %223 = vmatpush.msrb.mxu0 %v73_v36  ;;  %210 = vmatpush.msra.mxu3 %v63_v50 }
  0x2d   :  { %174 = vmatpush.msra.mxu2 %v63_v50  ;;  %251 = vmatpush.msrb.mxu1 %v89_v3 }
  0x2e   :  { %224 = vmatpush.msrb.mxu0 %v72_v37  ;;  %211 = vmatpush.msra.mxu3 %v62_v51 }
  0x2f   :  { %175 = vmatpush.msra.mxu2 %v62_v51  ;;  %252 = vmatpush.msrb.mxu1 %v88_v4 }
  0x30   :  { %225 = vmatpush.msrb.mxu0 %v71_v38  ;;  %212 = vmatpush.msra.mxu3 %v61_v52 }
  0x31   :  { %176 = vmatpush.msra.mxu2 %v61_v52  ;;  %253 = vmatpush.msrb.mxu1 %v87_v5  ;;  %v397_v5 = vmov 0.0  }
  0x32   :  { %226 = vmatpush.msrb.mxu0 %v70_v39 }
  0x33   :  { %254 = vmatpush.msrb.mxu1 %v86_v6  ;;  %270 = vmatpush.msrb.mxu2 %v108_v20 }
  0x34   :  { %227 = vmatpush.msrb.mxu0 %v69_v40 }
  0x35   :  { %255 = vmatpush.msrb.mxu1 %v85_v7  ;;  %271 = vmatpush.msrb.mxu2 %v107_v21 }
  0x36   :  { %228 = vmatpush.msrb.mxu0 %v68_v41 }
  0x37   :  { %256 = vmatpush.msrb.mxu1 %v84_v8  ;;  %272 = vmatpush.msrb.mxu2 %v106_v22 }
  0x38   :  { %229 = vmatpush.msrb.mxu0 %v67_v42 }
  0x39   :  { %257 = vmatpush.msrb.mxu1 %v83_v9  ;;  %273 = vmatpush.msrb.mxu2 %v105_v24 }
  0x3a   :  { %230 = vmatpush.msrb.mxu0 %v66_v43 }
  0x3b   :  { %258 = vmatpush.msrb.mxu1 %v82_v10  ;;  %274 = vmatpush.msrb.mxu2 %v104_v25 }
  0x3c   :  { %231 = vmatpush.msrb.mxu0 %v65_v45 }
  0x3d   :  { %259 = vmatpush.msrb.mxu1 %v81_v13  ;;  %275 = vmatpush.msrb.mxu2 %v103_v27 }
  0x3e   :  { %232 = vmatpush.msrb.mxu0 %v64_v47  ;;  %v96_v47 = vld [vmem:[#allocation2 + $0x218] sm:$0xff] }
  0x3f   :  { %260 = vmatpush.msrb.mxu1 %v80_v15  ;;  %276 = vmatpush.msrb.mxu2 %v102_v28 }
  0x40   :  { %233 = vmatpush.msrb.mxu0 %v63_v50  ;;  %v94_v50 = vld [vmem:[#allocation2 + $0x208] sm:$0xff] }
  0x41   :  { %261 = vmatpush.msrb.mxu1 %v79_v16  ;;  %277 = vmatpush.msrb.mxu2 %v101_v30  ;;  %v329_v16 = vlaneseq }
  0x42   :  { %234 = vmatpush.msrb.mxu0 %v62_v51  ;;  %v93_v51 = vld [vmem:[#allocation2 + $0x200] sm:$0xff] }
  0x43   :  { %262 = vmatpush.msrb.mxu1 %v78_v18  ;;  %278 = vmatpush.msrb.mxu2 %v100_v31  ;;  %v330_v20 = vshrl.u32 %v329_v16, 7  ;;  %v332_v21 = vand.u32 127, %v329_v16 }
  0x44   :  { %235 = vmatpush.msrb.mxu0 %v61_v52 }
  0x45   :  { %263 = vmatpush.msrb.mxu1 %v77_v19  ;;  %279 = vmatpush.msrb.mxu2 %v99_v33  ;;  %vm334_vm9 = vcmp.eq.s32.totalorder %v332_v21, 0  ;;  %vm333_vm10 = vcmp.eq.s32.totalorder %v330_v20, 0  ;;  %vm337_vm11 = vcmp.eq.s32.totalorder %v332_v21, 1 }
  0x46   :  { %vm335_vm12 = vmand %vm333_vm10, %vm334_vm9 }
  0x47   :  { %280 = vmatpush.msrb.mxu2 %v98_v34  ;;  %vm338_vm13 = vmand %vm333_vm10, %vm337_vm11 }
  0xa2   :  { %v132_v46 = vpop.f32.mrf.mxu0 }
  0xa3   :  { %v419_v48 = vadd.f32 %v132_v46, %v109_v44  ;;  %v97_v46 = vld [vmem:[#allocation2 + $0x220] sm:$0xff] }
  0xa4   :  { %281 = vmatpush.msrb.mxu2 %v97_v46 }
  0xa5   :  { %355 = vtanh.f32 %v419_v48 }
  0xa6   :  { %282 = vmatpush.msrb.mxu2 %v96_v47 }
  0xab   :  { %v356_v49 = vpop.eup %355 }
  0xac   :  { %152 = vmatmul.f32.vlgmr.msra.gmra.mxu1 %v356_v49  ;;  %v95_v49 = vld [vmem:[#allocation2 + $0x210] sm:$0xff] }
  0xad   :  { %283 = vmatpush.msrb.mxu2 %v95_v49 }
  0xaf   :  { %284 = vmatpush.msrb.mxu2 %v94_v50 }
  0xb1   :  { %285 = vmatpush.msrb.mxu2 %v93_v51 }
 0x129   :  { %v153_v54 = vpop.f32.mrf.mxu1 }
 0x12a   :  { %v154_v56 = vadd.f32 %v153_v54, %v110_v53 }
 0x12c   :  { %156 = vmax.xlane.f32.xlu0 %v154_v56  ;;  %v196_v57 = vmul.f32 %v154_v56, %v422_v55 }
 0x12e   :  { %213 = vmatmul.f32.vlgmr.msra.gmra.mxu3 %v196_v57  ;;  %v28_v57 = vld [vmem:[%s440_s0 + $0x8] sm:$0xff] }
 0x19f   :  { %v157_v58 = vpop.xlane.xlu0 %156 }
 0x1a0   :  { %v158_v59 = vsub.f32 %v154_v56, %v157_v58 }
 0x1a2   :  { %v159_v60 = vmul.f32 1.442695, %v158_v59 }
 0x1a4   :  { %357 = vpow2.f32 %v159_v60  ;;  %v114_v60 = vld [vmem:[#allocation2 + $0x2a8] sm:$0xff] }
 0x1aa   :  { %v425_v61 = vpop.eup %357 }
 0x1ab   :  { %177 = vmatmul.f32.vlgmr.msra.gmra.mxu2 %v425_v61 }
 0x1b1   :  { %v214_v62 = vpop.f32.mrf.mxu3 }
 0x1b2   :  { %vm217_vm0 = vcmp.gt.f32.partialorder %v154_v56, %v214_v62 }
 0x1b3   :  { %348 = vmatmul.msk.f32.vlgmr.msrb.gmra.mxu0 %vm217_vm0, %v396_v63 }
 0x22e   :  { %v178_v17 = vpop.f32.mrf.mxu2 }
 0x22f   :  { %359 = vrcp.f32 %v178_v17  ;;  %v192_v36 = vand.u32 2147483648, %v178_v17  ;;  %vm186_vm3 = vweird.f32 %v178_v17  ;;  %v190_v37 = vand.u32 2147483647, %v178_v17 }
 0x230   :  { %v237_v12 = vpop.f32.mrf.mxu0 }
 0x231   :  { %vm240_vm1 = vcmp.eq.f32.partialorder %v237_v12, 0.0  ;;  %v193_v39 = vor.u32 1.1754944e-38, %v192_v36  ;;  %vm191_vm5 = vcmp.eq.f32.partialorder %v190_v37, 8.507059e+37 }
 0x232   :  { %v241_v14 = vsel %vm240_vm1, %v113_v11, 8.0 }
 0x233   :  { %242 = vmin.xlane.f32.xlu0 %v241_v14 }
 0x235   :  { %v360_v23 = vpop.eup %359 }
 0x236   :  { %v182_v26 = vmul.f32 %v360_v23, %v178_v17  ;;  %vm187_vm2 = vweird.f32 %v360_v23 }
 0x237   :  { %vm188_vm4 = vmor %vm186_vm3, %vm187_vm2 }
 0x238   :  { %v183_v29 = vsub.f32 1.0, %v182_v26 }
 0x23a   :  { %v184_v32 = vmul.f32 %v360_v23, %v183_v29 }
 0x23c   :  { %v185_v35 = vadd.f32 %v360_v23, %v184_v32 }
 0x23e   :  { %v189_v38 = vsel %vm188_vm4, %v360_v23, %v185_v35 }
 0x23f   :  { %v194_v42 = vsel %vm191_vm5, %v193_v39, %v189_v38 }
 0x240   :  { %v195_v44 = vmul.f32 %v425_v61, %v194_v42  ;;  %v311_v61 = vmul.f32 %v114_v60, %v28_v57 }
 0x2a6   :  { %v243_v40 = vpop.xlane.xlu0 %242 }
 0x2a7   :  { %v244_v41 = vadd.f32 1.0, %v243_v40 }
 0x2a9   :  { %v245_v43 = vmin.f32 %v244_v41, 8.0 }
 0x2ab   :  { %vm246_vm6 = vcmp.lt.f32.partialorder %v113_v11, %v245_v43 }
 0x2ac   :  { %v247_v45 = vsel %vm246_vm6, %v195_v44, %v422_v55  ;;  %v111_v55 = vld [vmem:[#allocation2 + $0x290] sm:$0xff] }
 0x2ad   :  { %264 = vmatmul.f32.vlgmr.msrb.gmra.mxu1 %v247_v45  ;;  %328 = vst [vmem:[%s442_s2] sm:$0xff] %v247_v45 }
 0x32a   :  { %v265_v52 = vpop.f32.mrf.mxu1 }
 0x32b   :  { %v268_v53 = vadd.f32 %v265_v52, %v419_v48 }
 0x32d   :  { %361 = vtanh.f32 %v268_v53 }
 0x333   :  { %v362_v54 = vpop.eup %361 }
 0x334   :  { %286 = vmatmul.f32.vlgmr.msrb.gmra.mxu2 %v362_v54 }
 0x3b7   :  { %v287_v56 = vpop.f32.mrf.mxu2 }
 0x3b8   :  { %v288_v58 = vadd.f32 %v287_v56, %v111_v55 }
 0x3ba   :  { %290 = vmax.xlane.f32.xlu1 %v288_v58  ;;  %v300_v59 = vmul.f32 %v288_v58, %v28_v57 }
 0x3bc   :  { %301 = vadd.xlane.f32.xlu2 %v300_v59 }
 0x3c4   :  { %312 = vadd.xlane.f32.xlu2 %v311_v61 }
 0x42d   :  { %v291_v62 = vpop.xlane.xlu1 %290 }
 0x42e   :  { %v292_v63 = vsub.f32 %v288_v58, %v291_v62  ;;  %vm314_vm7 = vcmp.ge.f32.partialorder %v288_v58, %v291_v62 }
 0x42f   :  { %v315_v48 = vsel %vm314_vm7, %v114_v60, 128.0  ;;  %v302_v2 = vpop.xlane.xlu2 %301 }
 0x430   :  { %v293_v0 = vmul.f32 1.442695, %v292_v63  ;;  %316 = vmin.xlane.f32.xlu0 %v315_v48 }
 0x432   :  { %363 = vpow2.f32 %v293_v0 }
 0x437   :  { %v313_v4 = vpop.xlane.xlu2 %312 }
 0x438   :  { %v364_v1 = vpop.eup %363 }
 0x439   :  { %295 = vadd.xlane.f32.xlu1 %v364_v1 }
 0x4a3   :  { %v317_v3 = vpop.xlane.xlu0 %316 }
 0x4a4   :  { %vm318_vm8 = vcmp.eq.f32.partialorder %v317_v3, %v313_v4 }
 0x4a5   :  { %v349_v6 = vsel %vm318_vm8, 1.0, %v397_v5 }
 0x4a6   :  { %v321_v7 = vrot.slane %v349_v6, 4 }
 0x4a8   :  { %v322_v9 = vadd.f32 %v349_v6, %v321_v7 }
 0x4aa   :  { %v323_v11 = vrot.slane %v322_v9, 2 }
 0x4ac   :  { %v296_v8 = vpop.xlane.xlu1 %295  ;;  %v324_v14 = vadd.f32 %v323_v11, %v322_v9 }
 0x4ad   :  { %365 = vlog2.f32 %v296_v8 }
 0x4ae   :  { %v325_v18 = vrot.slane %v324_v14, 1 }
 0x4b0   :  { %v326_v23 = vadd.f32 %v325_v18, %v324_v14 }
 0x4b2   :  { %v327_v26 = vmul.f32 0.125, %v326_v23 }
 0x4b3   :  { %v366_v10 = vpop.eup %365 }
 0x4b4   :  { %v298_v12 = vmul.f32 0.6931472, %v366_v10  ;;  %v339_v29 = vsel %vm338_vm13, %v327_v26, 0.0 }
 0x4b6   :  { %v299_v13 = vadd.f32 %v298_v12, %v291_v62 }
 0x4b8   :  { %v303_v15 = vsub.f32 %v299_v13, %v302_v2 }
 0x4ba   :  { %v304_v17 = vrot.slane %v303_v15, 4 }
 0x4bc   :  { %v305_v19 = vadd.f32 %v304_v17, %v303_v15 }
 0x4be   :  { %v306_v22 = vrot.slane %v305_v19, 2 }
 0x4c0   :  { %v307_v24 = vadd.f32 %v306_v22, %v305_v19 }
 0x4c2   :  { %v308_v25 = vrot.slane %v307_v24, 1 }
 0x4c4   :  { %v309_v27 = vadd.f32 %v308_v25, %v307_v24 }
 0x4c6   :  { %v310_v28 = vmul.f32 0.125, %v309_v27 }
 0x4c8   :  { %v336_v30 = vsel %vm335_vm12, %v310_v28, 0.0 }
 0x4c9   :  { %v340_v31 = vadd.f32 %v339_v29, %v336_v30 }
 0x4cb   :  { %341 = vst [vmem:[%s442_s2 + $0x8] sm:$0xff] %v340_v31 }
 0x4cc   :  { %346 = vsyncpa [#allocation3], 1 }

</bundles_post_ra>
